<compile_context>
chip_gen: v6e
topology: v6e:2x2x1
jax: 0.10.0
libtpu: 0.0.40
codegen_flags: <defaults>
</compile_context>

<pallas_src>
import functools

import jax
import jax.numpy as jnp
from jax.experimental import pallas as pl
from jax.experimental.pallas import tpu as pltpu


def _sg_eval_kernel(x1_ref, x2_ref, o_ref, *, alpha):
    # Deterministic blend (test-time path). Compute in f32 on vregs,
    # store back in the I/O dtype.
    x1 = x1_ref[...].astype(jnp.float32)
    x2 = x2_ref[...].astype(jnp.float32)
    o_ref[...] = ((1.0 - alpha) * x1 + alpha * x2).astype(o_ref.dtype)


def _sg_train_kernel(x1_ref, x2_ref, bits_ref, o_ref, *, alpha):
    # Stochastic mixing (training-time path).
    inv = 1.0 / max(1e-8, 1.0 - alpha)  # compile-time constant multiply
    # P(bits >= thr) = 1 - alpha  for bits uniform over [0, 2^32)
    thr = jnp.uint32(min(int(alpha * (1 << 32)), (1 << 32) - 1))
    x1 = x1_ref[...].astype(jnp.float32)
    x2 = x2_ref[...].astype(jnp.float32)
    x1s = (x1 - alpha * x2) * inv
    keep = bits_ref[...] >= thr  # Bernoulli(1 - alpha) mask
    o_ref[...] = jnp.where(keep, x1s, x2).astype(o_ref.dtype)


def stochastic_gate(x1, x2, alpha_rate=0.3, training=False, key=None):
    """Pallas implementation of StochasticGate.forward."""
    assert x1.shape == x2.shape, "Number of features is different"
    b, c, h, w = x1.shape
    n, m = b * c, h * w
    # (8, 128) tiling constraint for the flattened lane-dense view.
    assert n % 8 == 0 and m % 128 == 0, "flattened shape must tile to (8,128)"

    x1f = x1.reshape(n, m)
    x2f = x2.reshape(n, m)
    out_shape = jax.ShapeDtypeStruct((n, m), x1.dtype)

    # Row-tile size: ~2 MiB per f32 tile per array. Small enough that
    # double-buffered in/out tiles fit v7x's tighter VMEM budget, large
    # enough to amortize per-grid-step overhead and stay near HBM roofline.
    target_bytes = 2 * 1024 * 1024
    tn = (target_bytes // (m * 4)) // 8 * 8
    tn = max(8, min(n, tn))
    grid = (pl.cdiv(n, tn),)

    # Tile only the sublane (row) axis; keep the full lane-dense last dim so
    # output stores are full unmasked vector stores.
    row_spec = pl.BlockSpec((tn, m), lambda i: (i, 0))
    cparams = pltpu.CompilerParams(dimension_semantics=("parallel",))

    if training:
        if key is None:
            key = jax.random.PRNGKey(0)
        bits = jax.random.bits(key, (n, m), dtype=jnp.uint32)
        kern = functools.partial(_sg_train_kernel, alpha=float(alpha_rate))
        out = pl.pallas_call(
            kern,
            out_shape=out_shape,
            grid=grid,
            in_specs=[row_spec, row_spec, row_spec],
            out_specs=row_spec,
            compiler_params=cparams,
        )(x1f, x2f, bits)
    else:
        kern = functools.partial(_sg_eval_kernel, alpha=float(alpha_rate))
        out = pl.pallas_call(
            kern,
            out_shape=out_shape,
            grid=grid,
            in_specs=[row_spec, row_spec],
            out_specs=row_spec,
            compiler_params=cparams,
        )(x1f, x2f)

    return out.reshape(b, c, h, w)


if __name__ == "__main__":
    key = jax.random.PRNGKey(0)
    k1, k2, kmask = jax.random.split(key, 3)
    B, C, H, W = 2, 4, 16, 16
    x1 = jax.random.normal(k1, (B, C, H, W), dtype=jnp.float32)
    x2 = jax.random.normal(k2, (B, C, H, W), dtype=jnp.float32)
    alpha = 0.3

    # --- eval path (deterministic) ---
    y_eval = stochastic_gate(x1, x2, alpha_rate=alpha, training=False)
    y_eval = jax.block_until_ready(y_eval)
    ref = (1.0 - alpha) * x1 + alpha * x2
    assert y_eval.shape == (B, C, H, W)
    assert y_eval.dtype == x1.dtype
    assert jnp.allclose(y_eval, ref, atol=1e-5, rtol=1e-5), "eval path mismatch"

    # --- training path (stochastic) ---
    y_train = stochastic_gate(
        x1, x2, alpha_rate=alpha, training=True, key=kmask
    )
    y_train = jax.block_until_ready(y_train)
    # Each output element must equal either the scaled-x1 branch or x2.
    x1s = (x1 - alpha * x2) / max(1e-8, 1.0 - alpha)
    is_x1 = jnp.isclose(y_train, x1s, atol=1e-5)
    is_x2 = jnp.isclose(y_train, x2, atol=1e-5)
    assert bool(jnp.all(is_x1 | is_x2)), "training path produced off-branch values"
    # Loose statistical sanity check: ~alpha fraction takes the x2 branch.
    frac_x2 = float(jnp.mean((~is_x1).astype(jnp.float32)))
    assert 0.1 < frac_x2 < 0.5, f"drop fraction {frac_x2} far from alpha={alpha}"

    print("KERNEL_OK")
</pallas_src>

<mosaic_0001>
module attributes {stable_mosaic.version = 11 : i64} {
  func.func @_sg_eval_kernel(%arg0: i32, %arg1: memref<8x256xf32, #tpu.memory_space<vmem>>, %arg2: memref<8x256xf32, #tpu.memory_space<vmem>>, %arg3: memref<8x256xf32, #tpu.memory_space<vmem>>) attributes {dimension_semantics = [#tpu.dimension_semantics<parallel>], iteration_bounds = array<i64: 1>, scalar_prefetch = 0 : i64, scratch_operands = 0 : i64, tpu.core_type = #tpu.core_type<tc>, window_params = [{transform_indices = @transform_0, window_bounds = array<i64: 8, 256>}, {transform_indices = @transform_1, window_bounds = array<i64: 8, 256>}, {transform_indices = @transform_2, window_bounds = array<i64: 8, 256>}]} {
    %c0 = arith.constant 0 : index
    %c0_0 = arith.constant 0 : index
    %0 = vector.load %arg1[%c0, %c0_0] : memref<8x256xf32, #tpu.memory_space<vmem>>, vector<8x256xf32>
    %c0_1 = arith.constant 0 : index
    %c0_2 = arith.constant 0 : index
    %1 = vector.load %arg2[%c0_1, %c0_2] : memref<8x256xf32, #tpu.memory_space<vmem>>, vector<8x256xf32>
    %cst = arith.constant 0.699999988 : f32
    %2 = vector.broadcast %cst : f32 to vector<8x256xf32>
    %3 = arith.mulf %2, %0 : vector<8x256xf32>
    %cst_3 = arith.constant 3.000000e-01 : f32
    %4 = vector.broadcast %cst_3 : f32 to vector<8x256xf32>
    %5 = arith.mulf %4, %1 : vector<8x256xf32>
    %6 = arith.addf %3, %5 : vector<8x256xf32>
    %c0_4 = arith.constant 0 : index
    %c0_5 = arith.constant 0 : index
    %7 = vector.load %arg3[%c0_4, %c0_5] : memref<8x256xf32, #tpu.memory_space<vmem>>, vector<8x256xf32>
    tpu.vector_store %arg3[%c0_4, %c0_5], %6 {strides = array<i32>} : memref<8x256xf32, #tpu.memory_space<vmem>>, vector<8x256xf32>,
    return
  }
  func.func @transform_0(%arg0: i32) -> (i32, i32) {
    %c0_i32 = arith.constant 0 : i32
    %c0_i32_0 = arith.constant 0 : i32
    return %arg0, %c0_i32 : i32, i32
  }
  func.func @transform_1(%arg0: i32) -> (i32, i32) {
    %c0_i32 = arith.constant 0 : i32
    %c0_i32_0 = arith.constant 0 : i32
    return %arg0, %c0_i32 : i32, i32
  }
  func.func @transform_2(%arg0: i32) -> (i32, i32) {
    %c0_i32 = arith.constant 0 : i32
    %c0_i32_0 = arith.constant 0 : i32
    return %arg0, %c0_i32 : i32, i32
  }
}

</mosaic_0001>

<bundles_post_ra>
// kernel: tpu_custom_call.1
= control target key start
LH: loop header
LB: loop body
LE: loop exit
PB: predicated region body
PF: predicated region fallthrough
CT: control target
= control target key end

     0   :  { %7 = vsyncpa [#allocation3], 0  ;;  %s160_s0 = inlined_call_operand.hbm [shape: f32[8,256], index: 0, kind: input, shape index: {}]   ;;  %s161_s1 = inlined_call_operand.hbm [shape: f32[8,256], index: 1, kind: input, shape index: {}]   ;;  %s162_s2 = inlined_call_operand.hbm [shape: f32[8,256], index: 2, kind: output, shape index: {}]  }
   0x1   :  { %8 = vsyncpa [#allocation6], 0 }
   0x2   :  { %9 = vsyncpa [#allocation4], 0  ;;  %s133_s9 = smov [#allocation2]   ;;  %s134_s11 = smov [#allocation5]  }
   0x3   :  { %s16_s10 = sshll.u32 %s133_s9, 4  ;;  %s26_s12 = sshll.u32 %s134_s11, 4  ;;  %s17_s10 = int_to_ptr.vmem [resolvable:$true] %s16_s10  ;;  %s27_s12 = int_to_ptr.vmem [resolvable:$true] %s26_s12 }
   0x4   :  { %s75_s13 = scalar_lea.vmem %s17_s10, 256  ;;  %p80_p1 = scmp.lt.s32.totalorder %s17_s10, %s17_s10 }
   0x5   :  { %p76_p0 = scmp.ne.s32.totalorder %s17_s10, %s75_s13  ;;  %p81_p2 = scmp.lt.s32.totalorder %s75_s13, %s75_s13 }
   0x7   :  { %p82_p3 = por %p81_p2, %p80_p1 }
   0x9   :  { %p83_p4 = pnand %p82_p3, %p76_p0 }
   0xb   :  { %86 = shalt.err (!%p83_p4)
}
   0xc   :  { %19 = dma.hbm_to_vmem [thread:$0]  %s160_s0, 256, %s17_s10, [#allocation3]  }
   0xd   :  { %s95_s16 = scalar_lea.vmem %s27_s12, 256  ;;  %p100_p6 = scmp.lt.s32.totalorder %s27_s12, %s27_s12 }
   0xe   :  { %p96_p5 = scmp.ne.s32.totalorder %s27_s12, %s95_s16  ;;  %p101_p7 = scmp.lt.s32.totalorder %s95_s16, %s95_s16 }
  0x10   :  { %p102_p8 = por %p101_p7, %p100_p6 }
  0x12   :  { %p103_p9 = pnand %p102_p8, %p96_p5 }
  0x14   :  { %106 = shalt.err (!%p103_p9)
}
  0x15   :  { %29 = dma.hbm_to_vmem [thread:$0]  %s161_s1, 256, %s27_s12, [#allocation6]  }
  0x16   :  { %127 = dma.done.wait [#allocation3], 256  }
  0x17   :  { %128 = vsyncadd [#allocation3], 4294967040 }
  0x18   :  { %129 = dma.done.wait [#allocation6], 256  }
  0x19   :  { %130 = vsyncadd [#allocation6], 4294967040  ;;  %v36_v0 = vld [vmem:[#allocation2] sm:$0xff]  ;;  %v38_v1 = vld [vmem:[#allocation5] sm:$0xff]  ;;  %s135_s0 = smov [#allocation7]  }
  0x1a   :  { %v37_v2 = vld [vmem:[#allocation2 + $0x8] sm:$0xff]  ;;  %v40_v3 = vmul.f32 0.7, %v36_v0  ;;  %v42_v4 = vmul.f32 0.3, %v38_v1  ;;  %v39_v5 = vld [vmem:[#allocation5 + $0x8] sm:$0xff] }
  0x1b   :  { %s54_s19 = sshll.u32 %s135_s0, 4  ;;  %v41_v6 = vmul.f32 0.7, %v37_v2  ;;  %v43_v7 = vmul.f32 0.3, %v39_v5  ;;  %s55_s19 = int_to_ptr.vmem [resolvable:$true] %s54_s19 }
  0x1c   :  { %v44_v8 = vadd.f32 %v42_v4, %v40_v3  ;;  %s107_s1 = scalar_lea.vmem %s55_s19, 256  ;;  %p112_p11 = scmp.lt.s32.totalorder %s55_s19, %s55_s19 }
  0x1d   :  { %v45_v9 = vadd.f32 %v43_v7, %v41_v6  ;;  %p108_p10 = scmp.ne.s32.totalorder %s55_s19, %s107_s1  ;;  %p113_p12 = scmp.lt.s32.totalorder %s107_s1, %s107_s1 }
  0x1e   :  { %46 = vst [vmem:[#allocation7] sm:$0xff] %v44_v8 }
  0x1f   :  { %47 = vst [vmem:[#allocation7 + $0x8] sm:$0xff] %v45_v9  ;;  %p114_p13 = por %p113_p12, %p112_p11 }
  0x21   :  { %p115_p0 = pnand %p114_p13, %p108_p10 }
  0x23   :  { %118 = shalt.err (!%p115_p0)
}
  0x24   :  { %57 = dma.vmem_to_hbm [thread:$0]  %s55_s19, 256, %s162_s2, [#allocation4]  }
  0x25   :  { %131 = dma.done.wait [#allocation4], 256  }
  0x26   :  { %132 = vsyncadd [#allocation4], 4294967040 }
  0x27   :  { %61 = vsyncpa [#allocation3], 1 }
  0x28   :  { %62 = vsyncpa [#allocation6], 1 }
  0x29   :  { %63 = vsyncpa [#allocation4], 1 }

</bundles_post_ra>
